<compile_context>
chip_gen: v5e
topology: v5e:2x2
jax: 0.10.0
libtpu: 0.0.40
codegen_flags: <defaults>
</compile_context>

<pallas_src>
import jax
import jax.numpy as jnp
from jax.experimental import pallas as pl
from jax.experimental.pallas import tpu as pltpu


def _round_up(x: int, m: int) -> int:
    return ((x + m - 1) // m) * m


def _mlp_kernel(h_ref, w1_ref, b1_ref, w2_ref, b2_ref, o_ref):
    """Fused MLP for one row-panel of nodes.

    h_ref  : (tm, Fi)        node-feature tile in its ORIGINAL dtype (e.g. f32)
    w1_ref : (Fi, Hpad)      linear1 weight, transposed to [in,out], zero-padded cols
    b1_ref : (1, Hpad)       linear1 bias (f32), zero-padded
    w2_ref : (Hpad, Fo_pad)  linear2 weight, transposed, zero-padded rows/cols
    b2_ref : (1, Fo_pad)     linear2 bias (f32), zero-padded
    o_ref  : (tm, Fo_pad)    output tile (compute dtype, e.g. bf16)
    """
    # In-register cast to the MXU compute dtype (hidden under DMA/MXU work).
    h = h_ref[...].astype(w1_ref.dtype)
    # Layer 1: MXU matmul, f32 accumulation; bias-add + ReLU in f32 on the VPU.
    z1 = jnp.dot(h, w1_ref[...], preferred_element_type=jnp.float32) + b1_ref[...]
    h1 = jnp.maximum(z1, 0.0).astype(w2_ref.dtype)
    # Layer 2: second MXU matmul; h1 stays in vregs (never touches HBM).
    z2 = jnp.dot(h1, w2_ref[...], preferred_element_type=jnp.float32) + b2_ref[...]
    o_ref[...] = z2.astype(o_ref.dtype)


def prepare_params(params, *, compute_dtype=jnp.bfloat16):
    """One-time weight prep: transpose nn.Linear (out,in) -> (in,out), zero-pad the
    hidden and output dims to multiples of 128 (lane-dense), and cast to the MXU
    compute dtype. Hoist this out of the per-step forward (or run it under jit so
    it constant-folds)."""
    w1, b1, w2, b2 = params["w1"], params["b1"], params["w2"], params["b2"]
    hid, fi = w1.shape
    fo = w2.shape[0]
    h_pad = _round_up(hid, 128)
    fo_pad = _round_up(fo, 128)

    w1t = jnp.zeros((fi, h_pad), compute_dtype).at[:, :hid].set(w1.T.astype(compute_dtype))
    b1p = jnp.zeros((1, h_pad), jnp.float32).at[:, :hid].set(b1.astype(jnp.float32))
    w2t = jnp.zeros((h_pad, fo_pad), compute_dtype).at[:hid, :fo].set(w2.T.astype(compute_dtype))
    b2p = jnp.zeros((1, fo_pad), jnp.float32).at[:, :fo].set(b2.astype(jnp.float32))
    return {"w1t": w1t, "b1": b1p, "w2t": w2t, "b2": b2p,
            "in_feats": int(fi), "out_feats": int(fo)}


def mlp_forward(g, h, params, *, compute_dtype=jnp.bfloat16, out_dtype=None,
                row_tile=512):
    """Mirrors MLP.forward(g, h): the graph argument is accepted but unused."""
    del g  # MLP.forward ignores the graph.

    if "w1t" not in params:
        # Raw nn.Linear-style params were passed; prep on the fly (prefer hoisting).
        params = prepare_params(params, compute_dtype=compute_dtype)

    w1t, b1, w2t, b2 = params["w1t"], params["b1"], params["w2t"], params["b2"]
    fo = params["out_feats"]
    n, fi = h.shape
    assert fi == params["in_feats"], (fi, params["in_feats"])
    h_pad = w1t.shape[1]
    fo_pad = w2t.shape[1]
    out_dtype = compute_dtype if out_dtype is None else out_dtype

    # Row-panel tile: multiple of 16 (bf16 sublane packing; also covers f32's 8).
    tm = min(row_tile, _round_up(n, 16))
    grid_m = pl.cdiv(n, tm)
    # v7x megacore: prefer an even number of row panels so both TensorCores get
    # equal work (single-TC v5e/v6e are indifferent).
    if grid_m > 1 and grid_m % 2 == 1:
        tm_alt = _round_up(-(-n // (grid_m + 1)), 16)
        if tm_alt >= 16 and pl.cdiv(n, tm_alt) % 2 == 0:
            tm = tm_alt
            grid_m = pl.cdiv(n, tm)

    in_b = jnp.dtype(h.dtype).itemsize
    cd_b = jnp.dtype(compute_dtype).itemsize
    out_b = jnp.dtype(out_dtype).itemsize

    # VMEM budget: resident weights/biases (x2 in case the single-buffer request is
    # ignored) + double-buffered input/output row panels + headroom. Clamp to 64 MiB
    # (v7x physical VMEM).
    weight_bytes = (fi * h_pad + h_pad * fo_pad) * cd_b + (h_pad + fo_pad) * 4
    act_bytes = 2 * tm * (fi * in_b + fo_pad * out_b)
    vmem_limit = int(min(max(2 * weight_bytes + act_bytes + (4 << 20), 32 << 20), 64 << 20))
    # TODO(synk): for very large layers (weights no longer resident in VMEM, esp. on
    # v7x's 64 MiB) switch to a K-tiled grid axis with an f32 VMEM accumulator.

    cost = pl.CostEstimate(
        flops=2 * n * (fi * h_pad + h_pad * fo_pad),
        transcendentals=0,
        bytes_accessed=n * fi * in_b + weight_bytes + n * fo_pad * out_b,
    )

    def run(single_buffer_weights):
        # Weight/bias blocks never change across the grid; single-buffer them to
        # halve their VMEM footprint when the jax build supports pipeline_mode.
        resident = dict(pipeline_mode=pl.Buffered(1)) if single_buffer_weights else {}
        return pl.pallas_call(
            _mlp_kernel,
            out_shape=jax.ShapeDtypeStruct((n, fo_pad), out_dtype),
            grid=(grid_m,),
            in_specs=[
                pl.BlockSpec((tm, fi), lambda i: (i, 0)),                     # h row panel
                pl.BlockSpec((fi, h_pad), lambda i: (0, 0), **resident),      # W1 (resident)
                pl.BlockSpec((1, h_pad), lambda i: (0, 0), **resident),       # b1
                pl.BlockSpec((h_pad, fo_pad), lambda i: (0, 0), **resident),  # W2 (resident)
                pl.BlockSpec((1, fo_pad), lambda i: (0, 0), **resident),      # b2
            ],
            out_specs=pl.BlockSpec((tm, fo_pad), lambda i: (i, 0)),
            compiler_params=pltpu.CompilerParams(
                dimension_semantics=("parallel",),   # row panels split across TCs on v7x
                vmem_limit_bytes=vmem_limit,
            ),
            cost_estimate=cost,
        )(h, w1t, b1, w2t, b2)

    try:
        out = run(True)
    except Exception:
        # pipeline_mode=pl.Buffered(1) not supported on this build -> default buffering.
        out = run(False)

    # Slice off the lane-padding columns; rows already match n (ragged last panel's
    # out-of-bounds stores are masked by Pallas).
    return out[:, :fo]


def init_params(key, in_feats, hidden_size, out_feats):
    """Deterministic nn.Linear-style init: U(-1/sqrt(fan_in), 1/sqrt(fan_in))."""
    k1, k2, k3, k4 = jax.random.split(key, 4)
    lim1 = 1.0 / jnp.sqrt(in_feats)
    lim2 = 1.0 / jnp.sqrt(hidden_size)
    return {
        "w1": jax.random.uniform(k1, (hidden_size, in_feats), jnp.float32, -lim1, lim1),
        "b1": jax.random.uniform(k2, (hidden_size,), jnp.float32, -lim1, lim1),
        "w2": jax.random.uniform(k3, (out_feats, hidden_size), jnp.float32, -lim2, lim2),
        "b2": jax.random.uniform(k4, (out_feats,), jnp.float32, -lim2, lim2),
    }


def _ref_mlp(h, params):
    """Pure-JAX f32 reference of the PyTorch forward."""
    z1 = jnp.maximum(h @ params["w1"].T + params["b1"], 0.0)
    return z1 @ params["w2"].T + params["b2"]


if __name__ == "__main__":
    key = jax.random.PRNGKey(0)
    k_feat, k_param = jax.random.split(key)

    # Small shapes standing in for the Cora node-feature matrix.
    N = 32
    IN_FEATS = 16
    HIDDEN = 32
    OUT_FEATS = 8

    h = jax.random.normal(k_feat, (N, IN_FEATS), dtype=jnp.float32)
    raw_params = init_params(k_param, IN_FEATS, HIDDEN, OUT_FEATS)

    # One-time parameter prep (transpose / pad / cast) hoisted out of the forward.
    prepared = prepare_params(raw_params, compute_dtype=jnp.bfloat16)

    # The graph is irrelevant to MLP.forward; pass None for signature parity.
    out = mlp_forward(None, h, prepared)
    out = jax.block_until_ready(out)

    assert out.shape == (N, OUT_FEATS), out.shape
    out_f32 = out.astype(jnp.float32)
    assert bool(jnp.all(jnp.isfinite(out_f32)))

    # Numerical sanity check vs the pure-JAX f32 reference (loose tol: bf16 MXU
    # inputs + bf16 output). Pass compute_dtype=jnp.float32 for exact parity.
    ref = _ref_mlp(h, raw_params)
    assert bool(jnp.allclose(out_f32, ref, rtol=5e-2, atol=5e-2)), "mismatch vs reference"

    print("KERNEL_OK")
</pallas_src>

<mosaic_0001>
module attributes {stable_mosaic.version = 11 : i64} {
  func.func @_mlp_kernel(%arg0: i32, %arg1: memref<32x16xf32, #tpu.memory_space<vmem>>, %arg2: memref<16x128xbf16, #tpu.memory_space<vmem>>, %arg3: memref<1x128xf32, #tpu.memory_space<vmem>>, %arg4: memref<128x128xbf16, #tpu.memory_space<vmem>>, %arg5: memref<1x128xf32, #tpu.memory_space<vmem>>, %arg6: memref<32x128xbf16, #tpu.memory_space<vmem>>) attributes {dimension_semantics = [#tpu.dimension_semantics<parallel>], iteration_bounds = array<i64: 1>, scalar_prefetch = 0 : i64, scratch_operands = 0 : i64, tpu.core_type = #tpu.core_type<tc>, window_params = [{transform_indices = @transform_0, window_bounds = array<i64: 32, 16>}, {pipeline_mode = #tpu.pipeline_mode<synchronous>, transform_indices = @transform_1, window_bounds = array<i64: 16, 128>}, {pipeline_mode = #tpu.pipeline_mode<synchronous>, transform_indices = @transform_2, window_bounds = array<i64: 1, 128>}, {pipeline_mode = #tpu.pipeline_mode<synchronous>, transform_indices = @transform_3, window_bounds = array<i64: 128, 128>}, {pipeline_mode = #tpu.pipeline_mode<synchronous>, transform_indices = @transform_4, window_bounds = array<i64: 1, 128>}, {transform_indices = @transform_5, window_bounds = array<i64: 32, 128>}]} {
    %c0 = arith.constant 0 : index
    %c0_0 = arith.constant 0 : index
    %0 = vector.load %arg1[%c0, %c0_0] : memref<32x16xf32, #tpu.memory_space<vmem>>, vector<32x16xf32>
    %1 = arith.truncf %0 : vector<32x16xf32> to vector<32x16xbf16>
    %c0_1 = arith.constant 0 : index
    %c0_2 = arith.constant 0 : index
    %2 = vector.load %arg2[%c0_1, %c0_2] : memref<16x128xbf16, #tpu.memory_space<vmem>>, vector<16x128xbf16>
    %cst = arith.constant dense<0.000000e+00> : vector<32x128xf32>
    %3 = tpu.matmul %1, %2, %cst {dimension_numbers = #tpu.dot_dimension_numbers<[1], [0], [0], [1], [0, 0, 1, 1], [], []>} : vector<32x16xbf16>, vector<16x128xbf16>, vector<32x128xf32> -> vector<32x128xf32>
    %c0_3 = arith.constant 0 : index
    %c0_4 = arith.constant 0 : index
    %4 = vector.load %arg3[%c0_3, %c0_4] : memref<1x128xf32, #tpu.memory_space<vmem>>, vector<1x128xf32>
    %5 = vector.broadcast %4 : vector<1x128xf32> to vector<32x128xf32>
    %6 = arith.addf %3, %5 : vector<32x128xf32>
    %cst_5 = arith.constant 0.000000e+00 : f32
    %7 = vector.broadcast %cst_5 : f32 to vector<32x128xf32>
    %8 = arith.maximumf %6, %7 : vector<32x128xf32>
    %9 = arith.truncf %8 : vector<32x128xf32> to vector<32x128xbf16>
    %c0_6 = arith.constant 0 : index
    %c0_7 = arith.constant 0 : index
    %10 = vector.load %arg4[%c0_6, %c0_7] : memref<128x128xbf16, #tpu.memory_space<vmem>>, vector<128x128xbf16>
    %cst_8 = arith.constant dense<0.000000e+00> : vector<32x128xf32>
    %11 = tpu.matmul %9, %10, %cst_8 {dimension_numbers = #tpu.dot_dimension_numbers<[1], [0], [0], [1], [0, 0, 1, 1], [], []>} : vector<32x128xbf16>, vector<128x128xbf16>, vector<32x128xf32> -> vector<32x128xf32>
    %c0_9 = arith.constant 0 : index
    %c0_10 = arith.constant 0 : index
    %12 = vector.load %arg5[%c0_9, %c0_10] : memref<1x128xf32, #tpu.memory_space<vmem>>, vector<1x128xf32>
    %13 = vector.broadcast %12 : vector<1x128xf32> to vector<32x128xf32>
    %14 = arith.addf %11, %13 : vector<32x128xf32>
    %15 = arith.truncf %14 : vector<32x128xf32> to vector<32x128xbf16>
    %c0_11 = arith.constant 0 : index
    %c0_12 = arith.constant 0 : index
    %16 = vector.load %arg6[%c0_11, %c0_12] : memref<32x128xbf16, #tpu.memory_space<vmem>>, vector<32x128xbf16>
    tpu.vector_store %arg6[%c0_11, %c0_12], %15 {strides = array<i32>} : memref<32x128xbf16, #tpu.memory_space<vmem>>, vector<32x128xbf16>,
    return
  }
  func.func @transform_0(%arg0: i32) -> (i32, i32) {
    %c0_i32 = arith.constant 0 : i32
    %c0_i32_0 = arith.constant 0 : i32
    return %arg0, %c0_i32 : i32, i32
  }
  func.func @transform_1(%arg0: i32) -> (i32, i32) {
    %c0_i32 = arith.constant 0 : i32
    %c0_i32_0 = arith.constant 0 : i32
    %c0_i32_1 = arith.constant 0 : i32
    return %c0_i32, %c0_i32_0 : i32, i32
  }
  func.func @transform_2(%arg0: i32) -> (i32, i32) {
    %c0_i32 = arith.constant 0 : i32
    %c0_i32_0 = arith.constant 0 : i32
    %c0_i32_1 = arith.constant 0 : i32
    return %c0_i32, %c0_i32_0 : i32, i32
  }
  func.func @transform_3(%arg0: i32) -> (i32, i32) {
    %c0_i32 = arith.constant 0 : i32
    %c0_i32_0 = arith.constant 0 : i32
    %c0_i32_1 = arith.constant 0 : i32
    return %c0_i32, %c0_i32_0 : i32, i32
  }
  func.func @transform_4(%arg0: i32) -> (i32, i32) {
    %c0_i32 = arith.constant 0 : i32
    %c0_i32_0 = arith.constant 0 : i32
    %c0_i32_1 = arith.constant 0 : i32
    return %c0_i32, %c0_i32_0 : i32, i32
  }
  func.func @transform_5(%arg0: i32) -> (i32, i32) {
    %c0_i32 = arith.constant 0 : i32
    %c0_i32_0 = arith.constant 0 : i32
    return %arg0, %c0_i32 : i32, i32
  }
}

module attributes {stable_mosaic.version = 11 : i64} {
  func.func @_mlp_kernel(%arg0: i32, %arg1: memref<32x16xf32, #tpu.memory_space<vmem>>, %arg2: memref<16x128xbf16, #tpu.memory_space<vmem>>, %arg3: memref<1x128xf32, #tpu.memory_space<vmem>>, %arg4: memref<128x128xbf16, #tpu.memory_space<vmem>>, %arg5: memref<1x128xf32, #tpu.memory_space<vmem>>, %arg6: memref<32x128xbf16, #tpu.memory_space<vmem>>) attributes {dimension_semantics = [#tpu.dimension_semantics<parallel>], iteration_bounds = array<i64: 1>, scalar_prefetch = 0 : i64, scratch_operands = 0 : i64, tpu.core_type = #tpu.core_type<tc>, window_params = [{transform_indices = @transform_0, window_bounds = array<i64: 32, 16>}, {pipeline_mode = #tpu.pipeline_mode<synchronous>, transform_indices = @transform_1, window_bounds = array<i64: 16, 128>}, {pipeline_mode = #tpu.pipeline_mode<synchronous>, transform_indices = @transform_2, window_bounds = array<i64: 1, 128>}, {pipeline_mode = #tpu.pipeline_mode<synchronous>, transform_indices = @transform_3, window_bounds = array<i64: 128, 128>}, {pipeline_mode = #tpu.pipeline_mode<synchronous>, transform_indices = @transform_4, window_bounds = array<i64: 1, 128>}, {transform_indices = @transform_5, window_bounds = array<i64: 32, 128>}]} {
    %c0 = arith.constant 0 : index
    %c0_0 = arith.constant 0 : index
    %0 = vector.load %arg1[%c0, %c0_0] : memref<32x16xf32, #tpu.memory_space<vmem>>, vector<32x16xf32>
    %1 = arith.truncf %0 : vector<32x16xf32> to vector<32x16xbf16>
    %c0_1 = arith.constant 0 : index
    %c0_2 = arith.constant 0 : index
    %2 = vector.load %arg2[%c0_1, %c0_2] : memref<16x128xbf16, #tpu.memory_space<vmem>>, vector<16x128xbf16>
    %cst = arith.constant dense<0.000000e+00> : vector<32x128xf32>
    %3 = tpu.matmul %1, %2, %cst {dimension_numbers = #tpu.dot_dimension_numbers<[1], [0], [0], [1], [0, 0, 1, 1], [], []>} : vector<32x16xbf16>, vector<16x128xbf16>, vector<32x128xf32> -> vector<32x128xf32>
    %c0_3 = arith.constant 0 : index
    %c0_4 = arith.constant 0 : index
    %4 = vector.load %arg3[%c0_3, %c0_4] : memref<1x128xf32, #tpu.memory_space<vmem>>, vector<1x128xf32>
    %5 = vector.broadcast %4 : vector<1x128xf32> to vector<32x128xf32>
    %6 = arith.addf %3, %5 : vector<32x128xf32>
    %cst_5 = arith.constant 0.000000e+00 : f32
    %7 = vector.broadcast %cst_5 : f32 to vector<32x128xf32>
    %8 = arith.maximumf %6, %7 : vector<32x128xf32>
    %9 = arith.truncf %8 : vector<32x128xf32> to vector<32x128xbf16>
    %c0_6 = arith.constant 0 : index
    %c0_7 = arith.constant 0 : index
    %10 = vector.load %arg4[%c0_6, %c0_7] : memref<128x128xbf16, #tpu.memory_space<vmem>>, vector<128x128xbf16>
    %cst_8 = arith.constant dense<0.000000e+00> : vector<32x128xf32>
    %11 = tpu.matmul %9, %10, %cst_8 {dimension_numbers = #tpu.dot_dimension_numbers<[1], [0], [0], [1], [0, 0, 1, 1], [], []>} : vector<32x128xbf16>, vector<128x128xbf16>, vector<32x128xf32> -> vector<32x128xf32>
    %c0_9 = arith.constant 0 : index
    %c0_10 = arith.constant 0 : index
    %12 = vector.load %arg5[%c0_9, %c0_10] : memref<1x128xf32, #tpu.memory_space<vmem>>, vector<1x128xf32>
    %13 = vector.broadcast %12 : vector<1x128xf32> to vector<32x128xf32>
    %14 = arith.addf %11, %13 : vector<32x128xf32>
    %15 = arith.truncf %14 : vector<32x128xf32> to vector<32x128xbf16>
    %c0_11 = arith.constant 0 : index
    %c0_12 = arith.constant 0 : index
    %16 = vector.load %arg6[%c0_11, %c0_12] : memref<32x128xbf16, #tpu.memory_space<vmem>>, vector<32x128xbf16>
    tpu.vector_store %arg6[%c0_11, %c0_12], %15 {strides = array<i32>} : memref<32x128xbf16, #tpu.memory_space<vmem>>, vector<32x128xbf16>,
    return
  }
  func.func @transform_0(%arg0: i32) -> (i32, i32) {
    %c0_i32 = arith.constant 0 : i32
    %c0_i32_0 = arith.constant 0 : i32
    return %arg0, %c0_i32 : i32, i32
  }
  func.func @transform_1(%arg0: i32) -> (i32, i32) {
    %c0_i32 = arith.constant 0 : i32
    %c0_i32_0 = arith.constant 0 : i32
    %c0_i32_1 = arith.constant 0 : i32
    return %c0_i32, %c0_i32_0 : i32, i32
  }
  func.func @transform_2(%arg0: i32) -> (i32, i32) {
    %c0_i32 = arith.constant 0 : i32
    %c0_i32_0 = arith.constant 0 : i32
    %c0_i32_1 = arith.constant 0 : i32
    return %c0_i32, %c0_i32_0 : i32, i32
  }
  func.func @transform_3(%arg0: i32) -> (i32, i32) {
    %c0_i32 = arith.constant 0 : i32
    %c0_i32_0 = arith.constant 0 : i32
    %c0_i32_1 = arith.constant 0 : i32
    return %c0_i32, %c0_i32_0 : i32, i32
  }
  func.func @transform_4(%arg0: i32) -> (i32, i32) {
    %c0_i32 = arith.constant 0 : i32
    %c0_i32_0 = arith.constant 0 : i32
    %c0_i32_1 = arith.constant 0 : i32
    return %c0_i32, %c0_i32_0 : i32, i32
  }
  func.func @transform_5(%arg0: i32) -> (i32, i32) {
    %c0_i32 = arith.constant 0 : i32
    %c0_i32_0 = arith.constant 0 : i32
    return %arg0, %c0_i32 : i32, i32
  }
}

</mosaic_0001>

<bundles_post_ra>
// kernel: tpu_custom_call.1
= control target key start
LH: loop header
LB: loop body
LE: loop exit
PB: predicated region body
PF: predicated region fallthrough
CT: control target
= control target key end

     0   :  { %10 = vsyncpa [#allocation3], 0  ;;  %s395_s0 = inlined_call_operand.vmem [shape: f32[32,16], index: 0, kind: input, shape index: {}]   ;;  %s396_s1 = inlined_call_operand.vmem [shape: bf16[16,128], index: 1, kind: input, shape index: {}]   ;;  %s397_s2 = inlined_call_operand.vmem [shape: f32[1,128], index: 2, kind: input, shape index: {}]   ;;  %s398_s3 = inlined_call_operand.hbm [shape: bf16[128,128], index: 3, kind: input, shape index: {}]   ;;  %s399_s4 = inlined_call_operand.vmem [shape: f32[1,128], index: 4, kind: input, shape index: {}]   ;;  %s400_s5 = inlined_call_operand.hbm [shape: bf16[32,128], index: 5, kind: output, shape index: {}]  }
   0x1   :  { %11 = vsyncpa [#allocation4], 0  ;;  %s22_s20 = sshll.u32 %s398_s3, 4  ;;  %s326_s21 = smov [#allocation2]   ;;  %s23_s20 = int_to_ptr.hbm [resolvable:$true] %s22_s20 }
   0x2   :  { %s24_s22 = sshll.u32 %s326_s21, 4  ;;  %s327_s23 = smov 64   ;;  %s25_s22 = int_to_ptr.vmem [resolvable:$true] %s24_s22 }
   0x3   :  { %s328_s24 = smov 4  }
   0x4   :  { %30 = dma.hbm_to_vmem [thread:$0]  %s23_s20, 1024, %s25_s22, [#allocation3], %s327_s23, %s327_s23, %s328_s24  }
   0x5   :  { %322 = dma.done.wait [#allocation3], 1024  }
   0x6   :  { %323 = vsyncadd [#allocation3], 4294966272  ;;  %v240_v0 = vld [vmem:[%s396_s1] sm:$0xff]  ;;  %v39_v2 = vld [vmem:[%s395_s0 + $0x8] sm:$0xff]  ;;  %vm56_vm0 = vcmask 130048   ;;  %s189_s14 = sshll.u32 %s400_s5, 4  ;;  %s190_s14 = int_to_ptr.hbm [resolvable:$true] %s189_s14 }
   0x7   :  { %v38_v1 = vld [vmem:[%s395_s0] sm:$0xff]  ;;  %v248_v4 = vld [vmem:[#allocation2 + $0x38] sm:$0xff]  ;;  %70 = vmatpush.bf16.msra.mxu0 %v240_v0  ;;  %v247_v5 = vld [vmem:[#allocation2 + $0x30] sm:$0xff] }
   0x8   :  { %v42_v3 = vpack.c.bf16 %v39_v2, %v38_v1  ;;  %156 = vmatpush.bf16.msra.mxu1 %v248_v4  ;;  %260 = vmatpush.bf16.msra.mxu2 %v248_v4  ;;  %v246_v6 = vld [vmem:[#allocation2 + $0x28] sm:$0xff]  ;;  %v245_v7 = vld [vmem:[#allocation2 + $0x20] sm:$0xff]  ;;  %v40_v8 = vld [vmem:[%s395_s0 + $0x10] sm:$0xff] }
   0x9   :  { %v41_v9 = vld [vmem:[%s395_s0 + $0x18] sm:$0xff]  ;;  %v243_v12 = vld [vmem:[#allocation2 + $0x10] sm:$0xff]  ;;  %v242_v13 = vld [vmem:[#allocation2 + $0x8] sm:$0xff] }
   0xa   :  { %206 = vmatmul.msk.bf16.vlgmr.msra.gmra.mxu0 %vm56_vm0, %v42_v3  ;;  %v43_v10 = vpack.c.bf16 %v41_v9, %v40_v8  ;;  %v244_v11 = vld [vmem:[#allocation2 + $0x18] sm:$0xff]  ;;  %v241_v14 = vld [vmem:[#allocation2] sm:$0xff] }
   0xb   :  { %v272_v16 = vld [vmem:[%s397_s2] ss:$0 sm:$0xff]  ;;  %s329_s2 = smov [#allocation5]  }
   0xc   :  { %157 = vmatpush.bf16.msra.mxu1 %v247_v5  ;;  %261 = vmatpush.bf16.msra.mxu2 %v247_v5  ;;  %v273_v31 = vld [vmem:[%s399_s4] ss:$0 sm:$0xff]  ;;  %s187_s11 = sshll.u32 %s329_s2, 4  ;;  %s188_s11 = int_to_ptr.vmem [resolvable:$true] %s187_s11 }
  0x10   :  { %158 = vmatpush.bf16.msra.mxu1 %v246_v6  ;;  %262 = vmatpush.bf16.msra.mxu2 %v246_v6 }
  0x14   :  { %159 = vmatpush.bf16.msra.mxu1 %v245_v7  ;;  %263 = vmatpush.bf16.msra.mxu2 %v245_v7 }
  0x18   :  { %160 = vmatpush.bf16.msra.mxu1 %v244_v11  ;;  %264 = vmatpush.bf16.msra.mxu2 %v244_v11 }
  0x1a   :  { %207 = vmatmul.msk.bf16.gmra.mxu0 %vm56_vm0, %v43_v10 }
  0x1c   :  { %161 = vmatpush.bf16.msra.mxu1 %v243_v12  ;;  %265 = vmatpush.bf16.msra.mxu2 %v243_v12 }
  0x20   :  { %162 = vmatpush.bf16.msra.mxu1 %v242_v13  ;;  %266 = vmatpush.bf16.msra.mxu2 %v242_v13 }
  0x24   :  { %163 = vmatpush.bf16.msra.mxu1 %v241_v14  ;;  %267 = vmatpush.bf16.msra.mxu2 %v241_v14 }
  0x87   :  { %v72_v15 = vpop.f32.mrf.mxu0 }
  0x88   :  { %v73_v17 = vadd.f32 %v272_v16, %v72_v15 }
  0x8a   :  { %v82_v20 = vmax.f32 %v73_v17, 0.0 }
  0x8f   :  { %v74_v18 = vpop.f32.mrf.mxu0 }
  0x90   :  { %v75_v19 = vadd.f32 %v272_v16, %v74_v18 }
  0x92   :  { %v83_v21 = vmax.f32 %v75_v19, 0.0 }
  0x94   :  { %v86_v22 = vpack.c.bf16 %v83_v21, %v82_v20 }
  0x96   :  { %164 = vmatmul.bf16.vlgmr.msra.gmra.mxu1 %v86_v22 }
  0x97   :  { %v77_v23 = vpop.f32.mrf.mxu0 }
  0x98   :  { %v78_v24 = vadd.f32 %v272_v16, %v77_v23 }
  0x9a   :  { %v84_v27 = vmax.f32 %v78_v24, 0.0 }
  0x9f   :  { %v79_v25 = vpop.f32.mrf.mxu0 }
  0xa0   :  { %v80_v26 = vadd.f32 %v272_v16, %v79_v25 }
  0xa2   :  { %v85_v28 = vmax.f32 %v80_v26, 0.0 }
  0xa4   :  { %v87_v29 = vpack.c.bf16 %v85_v28, %v84_v27 }
  0xa6   :  { %169 = vmatmul.bf16.vlgmr.msra.gmra.mxu2 %v87_v29 }
 0x113   :  { %v165_v30 = vpop.f32.mrf.mxu1 }
 0x114   :  { %v166_v33 = vadd.f32 %v273_v31, %v165_v30 }
 0x11b   :  { %v167_v32 = vpop.f32.mrf.mxu1 }
 0x11c   :  { %v168_v34 = vadd.f32 %v273_v31, %v167_v32 }
 0x11e   :  { %v252_v35 = vpack.c.bf16 %v168_v34, %v166_v33 }
 0x120   :  { %253 = vst [vmem:[#allocation5] sm:$0xff] %v252_v35  }
 0x129   :  { %v170_v36 = vpop.f32.mrf.mxu2 }
 0x12a   :  { %v171_v38 = vadd.f32 %v273_v31, %v170_v36 }
 0x131   :  { %v172_v37 = vpop.f32.mrf.mxu2 }
 0x132   :  { %v173_v39 = vadd.f32 %v273_v31, %v172_v37 }
 0x134   :  { %v257_v40 = vpack.c.bf16 %v173_v39, %v171_v38 }
 0x136   :  { %259 = vst [vmem:[#allocation5 + $0x8] sm:$0xff] %v257_v40  }
 0x137   :  { %195 = dma.vmem_to_hbm [thread:$0]  %s188_s11, 256, %s190_s14, [#allocation4], %s327_s23, %s327_s23, %s328_s24  }
 0x138   :  { %324 = dma.done.wait [#allocation4], 256  }
 0x139   :  { %325 = vsyncadd [#allocation4], 4294967040 }
 0x13a   :  { %200 = vsyncpa [#allocation3], 1 }
 0x13b   :  { %201 = vsyncpa [#allocation4], 1 }

// kernel: tpu_custom_call.1
= control target key start
LH: loop header
LB: loop body
LE: loop exit
PB: predicated region body
PF: predicated region fallthrough
CT: control target
= control target key end

     0   :  { %10 = vsyncpa [#allocation3], 0  ;;  %s395_s0 = inlined_call_operand.vmem [shape: f32[32,16], index: 0, kind: input, shape index: {}]   ;;  %s396_s1 = inlined_call_operand.vmem [shape: bf16[16,128], index: 1, kind: input, shape index: {}]   ;;  %s397_s2 = inlined_call_operand.vmem [shape: f32[1,128], index: 2, kind: input, shape index: {}]   ;;  %s398_s3 = inlined_call_operand.hbm [shape: bf16[128,128], index: 3, kind: input, shape index: {}]   ;;  %s399_s4 = inlined_call_operand.vmem [shape: f32[1,128], index: 4, kind: input, shape index: {}]   ;;  %s400_s5 = inlined_call_operand.hbm [shape: bf16[32,128], index: 5, kind: output, shape index: {}]  }
   0x1   :  { %11 = vsyncpa [#allocation4], 0  ;;  %s22_s20 = sshll.u32 %s398_s3, 4  ;;  %s326_s21 = smov [#allocation2]   ;;  %s23_s20 = int_to_ptr.hbm [resolvable:$true] %s22_s20 }
   0x2   :  { %s24_s22 = sshll.u32 %s326_s21, 4  ;;  %s327_s23 = smov 64   ;;  %s25_s22 = int_to_ptr.vmem [resolvable:$true] %s24_s22 }
   0x3   :  { %s328_s24 = smov 4  }
   0x4   :  { %30 = dma.hbm_to_vmem [thread:$0]  %s23_s20, 1024, %s25_s22, [#allocation3], %s327_s23, %s327_s23, %s328_s24  }
   0x5   :  { %322 = dma.done.wait [#allocation3], 1024  }
   0x6   :  { %323 = vsyncadd [#allocation3], 4294966272  ;;  %v240_v0 = vld [vmem:[%s396_s1] sm:$0xff]  ;;  %v39_v2 = vld [vmem:[%s395_s0 + $0x8] sm:$0xff]  ;;  %vm56_vm0 = vcmask 130048   ;;  %s189_s14 = sshll.u32 %s400_s5, 4  ;;  %s190_s14 = int_to_ptr.hbm [resolvable:$true] %s189_s14 }
   0x7   :  { %v38_v1 = vld [vmem:[%s395_s0] sm:$0xff]  ;;  %v248_v4 = vld [vmem:[#allocation2 + $0x38] sm:$0xff]  ;;  %70 = vmatpush.bf16.msra.mxu0 %v240_v0  ;;  %v247_v5 = vld [vmem:[#allocation2 + $0x30] sm:$0xff] }
   0x8   :  { %v42_v3 = vpack.c.bf16 %v39_v2, %v38_v1  ;;  %156 = vmatpush.bf16.msra.mxu1 %v248_v4  ;;  %260 = vmatpush.bf16.msra.mxu2 %v248_v4  ;;  %v246_v6 = vld [vmem:[#allocation2 + $0x28] sm:$0xff]  ;;  %v245_v7 = vld [vmem:[#allocation2 + $0x20] sm:$0xff]  ;;  %v40_v8 = vld [vmem:[%s395_s0 + $0x10] sm:$0xff] }
   0x9   :  { %v41_v9 = vld [vmem:[%s395_s0 + $0x18] sm:$0xff]  ;;  %v243_v12 = vld [vmem:[#allocation2 + $0x10] sm:$0xff]  ;;  %v242_v13 = vld [vmem:[#allocation2 + $0x8] sm:$0xff] }
   0xa   :  { %206 = vmatmul.msk.bf16.vlgmr.msra.gmra.mxu0 %vm56_vm0, %v42_v3  ;;  %v43_v10 = vpack.c.bf16 %v41_v9, %v40_v8  ;;  %v244_v11 = vld [vmem:[#allocation2 + $0x18] sm:$0xff]  ;;  %v241_v14 = vld [vmem:[#allocation2] sm:$0xff] }
   0xb   :  { %v272_v16 = vld [vmem:[%s397_s2] ss:$0 sm:$0xff]  ;;  %s329_s2 = smov [#allocation5]  }
   0xc   :  { %157 = vmatpush.bf16.msra.mxu1 %v247_v5  ;;  %261 = vmatpush.bf16.msra.mxu2 %v247_v5  ;;  %v273_v31 = vld [vmem:[%s399_s4] ss:$0 sm:$0xff]  ;;  %s187_s11 = sshll.u32 %s329_s2, 4  ;;  %s188_s11 = int_to_ptr.vmem [resolvable:$true] %s187_s11 }
  0x10   :  { %158 = vmatpush.bf16.msra.mxu1 %v246_v6  ;;  %262 = vmatpush.bf16.msra.mxu2 %v246_v6 }
  0x14   :  { %159 = vmatpush.bf16.msra.mxu1 %v245_v7  ;;  %263 = vmatpush.bf16.msra.mxu2 %v245_v7 }
  0x18   :  { %160 = vmatpush.bf16.msra.mxu1 %v244_v11  ;;  %264 = vmatpush.bf16.msra.mxu2 %v244_v11 }
  0x1a   :  { %207 = vmatmul.msk.bf16.gmra.mxu0 %vm56_vm0, %v43_v10 }
  0x1c   :  { %161 = vmatpush.bf16.msra.mxu1 %v243_v12  ;;  %265 = vmatpush.bf16.msra.mxu2 %v243_v12 }
  0x20   :  { %162 = vmatpush.bf16.msra.mxu1 %v242_v13  ;;  %266 = vmatpush.bf16.msra.mxu2 %v242_v13 }
  0x24   :  { %163 = vmatpush.bf16.msra.mxu1 %v241_v14  ;;  %267 = vmatpush.bf16.msra.mxu2 %v241_v14 }
  0x87   :  { %v72_v15 = vpop.f32.mrf.mxu0 }
  0x88   :  { %v73_v17 = vadd.f32 %v272_v16, %v72_v15 }
  0x8a   :  { %v82_v20 = vmax.f32 %v73_v17, 0.0 }
  0x8f   :  { %v74_v18 = vpop.f32.mrf.mxu0 }
  0x90   :  { %v75_v19 = vadd.f32 %v272_v16, %v74_v18 }
  0x92   :  { %v83_v21 = vmax.f32 %v75_v19, 0.0 }
  0x94   :  { %v86_v22 = vpack.c.bf16 %v83_v21, %v82_v20 }
  0x96   :  { %164 = vmatmul.bf16.vlgmr.msra.gmra.mxu1 %v86_v22 }
  0x97   :  { %v77_v23 = vpop.f32.mrf.mxu0 }
  0x98   :  { %v78_v24 = vadd.f32 %v272_v16, %v77_v23 }
  0x9a   :  { %v84_v27 = vmax.f32 %v78_v24, 0.0 }
  0x9f   :  { %v79_v25 = vpop.f32.mrf.mxu0 }
  0xa0   :  { %v80_v26 = vadd.f32 %v272_v16, %v79_v25 }
  0xa2   :  { %v85_v28 = vmax.f32 %v80_v26, 0.0 }
  0xa4   :  { %v87_v29 = vpack.c.bf16 %v85_v28, %v84_v27 }
  0xa6   :  { %169 = vmatmul.bf16.vlgmr.msra.gmra.mxu2 %v87_v29 }
 0x113   :  { %v165_v30 = vpop.f32.mrf.mxu1 }
 0x114   :  { %v166_v33 = vadd.f32 %v273_v31, %v165_v30 }
 0x11b   :  { %v167_v32 = vpop.f32.mrf.mxu1 }
 0x11c   :  { %v168_v34 = vadd.f32 %v273_v31, %v167_v32 }
 0x11e   :  { %v252_v35 = vpack.c.bf16 %v168_v34, %v166_v33 }
 0x120   :  { %253 = vst [vmem:[#allocation5] sm:$0xff] %v252_v35  }
 0x129   :  { %v170_v36 = vpop.f32.mrf.mxu2 }
 0x12a   :  { %v171_v38 = vadd.f32 %v273_v31, %v170_v36 }
 0x131   :  { %v172_v37 = vpop.f32.mrf.mxu2 }
 0x132   :  { %v173_v39 = vadd.f32 %v273_v31, %v172_v37 }
 0x134   :  { %v257_v40 = vpack.c.bf16 %v173_v39, %v171_v38 }
 0x136   :  { %259 = vst [vmem:[#allocation5 + $0x8] sm:$0xff] %v257_v40  }
 0x137   :  { %195 = dma.vmem_to_hbm [thread:$0]  %s188_s11, 256, %s190_s14, [#allocation4], %s327_s23, %s327_s23, %s328_s24  }
 0x138   :  { %324 = dma.done.wait [#allocation4], 256  }
 0x139   :  { %325 = vsyncadd [#allocation4], 4294967040 }
 0x13a   :  { %200 = vsyncpa [#allocation3], 1 }
 0x13b   :  { %201 = vsyncpa [#allocation4], 1 }

</bundles_post_ra>
